<compile_context>
chip_gen: v7x
topology: tpu7x:2x2x1
jax: 0.10.0
libtpu: 0.0.40
codegen_flags: <defaults>
</compile_context>

<pallas_src>
import functools

import jax
import jax.numpy as jnp
from jax import lax
from jax.experimental import pallas as pl
from jax.experimental.pallas import tpu as pltpu


def _round_up(x, m):
    return ((x + m - 1) // m) * m


def _tpu_vmem_capacity_bytes():
    """Best-effort VMEM capacity query; None if unavailable."""
    try:
        info = pltpu.get_tpu_info()
        cap = getattr(info, "vmem_capacity_bytes", None)
        if cap:
            return int(cap)
    except Exception:
        pass
    return None


def _flash_attn_kernel(q_ref, k_ref, v_ref, o_ref, m_sc, l_sc, acc_sc, *,
                       nk, needs_mask, compute_dtype, exp_in_compute_dtype,
                       exact_reciprocal):
    """Online-softmax flash attention for one (batch*head, q-tile) over kv tiles."""
    ki = pl.program_id(2)

    @pl.when(ki == 0)
    def _init():
        m_sc[...] = jnp.full(m_sc.shape, -jnp.inf, jnp.float32)
        l_sc[...] = jnp.zeros(l_sc.shape, jnp.float32)
        acc_sc[...] = jnp.zeros(acc_sc.shape, jnp.float32)

    q = q_ref[0]                    # (tq, d_k)  compute dtype, pre-scaled by 1/sqrt(d_k)
    k = k_ref[0]                    # (tk, d_k)
    v = v_ref[0]                    # (tk, d_v)
    tk = k.shape[0]

    # scores = q @ k^T without materializing a transpose (contract the d_k axes).
    s = lax.dot_general(q, k, dimension_numbers=(((1,), (1,)), ((), ())),
                        preferred_element_type=jnp.float32)          # (tq, tk) f32

    if needs_mask:
        # Padded key columns (>= nk) must not contribute to the softmax.
        col = ki * tk + lax.broadcasted_iota(jnp.int32, s.shape, 1)
        s = jnp.where(col < nk, s, -jnp.inf)

    m_prev = m_sc[...]                                                # (tq, 1)
    m_new = jnp.maximum(m_prev, jnp.max(s, axis=-1, keepdims=True))
    alpha = jnp.exp(m_prev - m_new)                                   # (tq, 1)

    if exp_in_compute_dtype:
        # bf16 exp (EUP fast path on v6e/v7x; older chips upconvert): p comes out
        # directly in the MXU compute dtype, no separate (tq, tk) cast for the PV dot.
        p = jnp.exp((s - m_new).astype(compute_dtype))                # (tq, tk)
        row_sum = jnp.sum(p, axis=-1, keepdims=True, dtype=jnp.float32)
        pv = jnp.dot(p, v, preferred_element_type=jnp.float32)        # (tq, d_v) f32
    else:
        p = jnp.exp(s - m_new)
        row_sum = jnp.sum(p, axis=-1, keepdims=True)
        pv = jnp.dot(p.astype(compute_dtype), v, preferred_element_type=jnp.float32)

    l_sc[...] = alpha * l_sc[...] + row_sum
    acc_sc[...] = alpha * acc_sc[...] + pv
    m_sc[...] = m_new
    # TODO(synk): dropout on the attention probabilities is identity (eval mode).

    @pl.when(ki == pl.num_programs(2) - 1)
    def _finalize():
        if exact_reciprocal:
            o = acc_sc[...] / l_sc[...]
        else:
            o = acc_sc[...] * pl.reciprocal(l_sc[...], approx=True)
        o_ref[0] = o.astype(o_ref.dtype)


@functools.partial(jax.jit,
                   static_argnames=("h", "d_k", "d_v", "compute_dtype",
                                    "q_tile", "kv_tile"))
def scaled_dot_product_attention(queries, keys, values, params, *, h, d_k, d_v,
                                 compute_dtype=jnp.bfloat16,
                                 q_tile=None, kv_tile=None):
    """queries: (b, nq, d_model); keys/values: (b, nk, d_model)."""
    wq, bq, wk, bk, wv, bv, wo, bo = params
    b_s, nq, d_model = queries.shape
    nk = keys.shape[1]
    out_dtype = queries.dtype
    cdt = jnp.dtype(compute_dtype)
    cdt_is_f32 = cdt == jnp.dtype(jnp.float32)

    # ---- Per-generation VMEM budget and tile defaults (review items 4 & 5) ----
    cap = _tpu_vmem_capacity_bytes()
    if cap is None:
        vmem_limit, default_tile = 48 * 1024 * 1024, 256         # safe everywhere
    elif cap <= 64 * 1024 * 1024:                                 # v7x-class: 64 MiB / TC
        vmem_limit, default_tile = (cap * 3) // 4, 256            # ~48 MiB, leave headroom
    else:                                                         # v5e / v6e: 128 MiB
        vmem_limit, default_tile = min(96 * 1024 * 1024, (cap * 3) // 4), 512
    tq_req = default_tile if q_tile is None else q_tile
    tk_req = default_tile if kv_tile is None else kv_tile

    scale = 1.0 / (float(d_k) ** 0.5)

    # ---- Hoisted, head-fused input projections (review items 1 & 2) ----
    # One full-width matmul per tensor, done once (no per-q-tile K/V re-projection,
    # no per-head small-N matmuls).  Output is head-major (b, h, n, d_k|d_v).
    wq3 = (wq * scale).reshape(d_model, h, d_k).astype(cdt)
    wk3 = wk.reshape(d_model, h, d_k).astype(cdt)
    wv3 = wv.reshape(d_model, h, d_v).astype(cdt)
    bq3 = (bq * scale).reshape(1, h, 1, d_k).astype(jnp.float32)
    bk3 = bk.reshape(1, h, 1, d_k).astype(jnp.float32)
    bv3 = bv.reshape(1, h, 1, d_v).astype(jnp.float32)

    qp = (jnp.einsum("bnd,dhf->bhnf", queries.astype(cdt), wq3,
                     preferred_element_type=jnp.float32) + bq3).astype(cdt)
    kp = (jnp.einsum("bnd,dhf->bhnf", keys.astype(cdt), wk3,
                     preferred_element_type=jnp.float32) + bk3).astype(cdt)
    vp = (jnp.einsum("bnd,dhf->bhnf", values.astype(cdt), wv3,
                     preferred_element_type=jnp.float32) + bv3).astype(cdt)

    qp = qp.reshape(b_s * h, nq, d_k)
    kp = kp.reshape(b_s * h, nk, d_k)
    vp = vp.reshape(b_s * h, nk, d_v)

    # ---- Sequence tiling (+ masked zero-padding for ragged lengths, item 11) ----
    tq = _round_up(min(tq_req, _round_up(nq, 8)), 8)
    tk = _round_up(min(tk_req, _round_up(nk, 8)), 8)
    nq_p = _round_up(nq, tq)
    nk_p = _round_up(nk, tk)
    if nq_p != nq:
        qp = jnp.pad(qp, ((0, 0), (0, nq_p - nq), (0, 0)))
    if nk_p != nk:
        kp = jnp.pad(kp, ((0, 0), (0, nk_p - nk), (0, 0)))
        vp = jnp.pad(vp, ((0, 0), (0, nk_p - nk), (0, 0)))

    grid = (b_s * h, nq_p // tq, nk_p // tk)
    kernel = functools.partial(
        _flash_attn_kernel,
        nk=nk,
        needs_mask=(nk_p != nk),
        compute_dtype=cdt,
        exp_in_compute_dtype=not cdt_is_f32,
        exact_reciprocal=cdt_is_f32)

    att = pl.pallas_call(
        kernel,
        out_shape=jax.ShapeDtypeStruct((b_s * h, nq_p, d_v), cdt),
        grid_spec=pltpu.PrefetchScalarGridSpec(
            num_scalar_prefetch=0,
            grid=grid,                                   # reduction (kv) axis last
            in_specs=[
                pl.BlockSpec((1, tq, d_k), lambda bh, qi, ki: (bh, qi, 0)),
                pl.BlockSpec((1, tk, d_k), lambda bh, qi, ki: (bh, ki, 0)),
                pl.BlockSpec((1, tk, d_v), lambda bh, qi, ki: (bh, ki, 0)),
            ],
            out_specs=pl.BlockSpec((1, tq, d_v), lambda bh, qi, ki: (bh, qi, 0)),
            scratch_shapes=[
                pltpu.VMEM((tq, 1), jnp.float32),    # running max  m
                pltpu.VMEM((tq, 1), jnp.float32),    # running sum  l
                pltpu.VMEM((tq, d_v), jnp.float32),  # running accumulator
            ],
        ),
        compiler_params=pltpu.CompilerParams(
            dimension_semantics=("parallel", "parallel", "arbitrary"),
            vmem_limit_bytes=int(vmem_limit),
        ),
    )(qp, kp, vp)

    att = att.reshape(b_s, h, nq_p, d_v)
    if nq_p != nq:
        att = att[:, :, :nq, :]      # fused into the epilogue einsum under jit

    # ---- Hoisted, head-fused output projection (review item 3) ----
    # Contracts both head and d_v axes in one dot: K = h*d_v >= MXU width.
    wo3 = wo.reshape(h, d_v, d_model).astype(cdt)
    out = jnp.einsum("bhqf,hfm->bqm", att, wo3, preferred_element_type=jnp.float32)
    out = out + bo.reshape(1, 1, d_model).astype(jnp.float32)
    return out.astype(out_dtype)


def init_params(key, d_model, d_k, d_v, h, dtype=jnp.float32):
    """nn.Linear init of the module: weight ~ N(0, 0.001), bias = 0.
    Weights stored as (in_features, out_features)."""
    ks = jax.random.split(key, 4)
    wq = jax.random.normal(ks[0], (d_model, h * d_k), dtype) * 0.001
    wk = jax.random.normal(ks[1], (d_model, h * d_k), dtype) * 0.001
    wv = jax.random.normal(ks[2], (d_model, h * d_v), dtype) * 0.001
    wo = jax.random.normal(ks[3], (h * d_v, d_model), dtype) * 0.001
    bq = jnp.zeros((h * d_k,), dtype)
    bk = jnp.zeros((h * d_k,), dtype)
    bv = jnp.zeros((h * d_v,), dtype)
    bo = jnp.zeros((d_model,), dtype)
    return (wq, bq, wk, bk, wv, bv, wo, bo)


def reference(queries, keys, values, params, *, h, d_k, d_v):
    """Pure-JAX reference mirroring the PyTorch forward (dropout in eval mode)."""
    wq, bq, wk, bk, wv, bv, wo, bo = params
    b_s, nq, _ = queries.shape
    nk = keys.shape[1]
    q = (queries @ wq + bq).reshape(b_s, nq, h, d_k).transpose(0, 2, 1, 3)
    k = (keys @ wk + bk).reshape(b_s, nk, h, d_k).transpose(0, 2, 3, 1)
    v = (values @ wv + bv).reshape(b_s, nk, h, d_v).transpose(0, 2, 1, 3)
    att = jnp.einsum("bhqd,bhdk->bhqk", q, k) / jnp.sqrt(jnp.float32(d_k))
    att = jax.nn.softmax(att, axis=-1)
    out = jnp.einsum("bhqk,bhkd->bhqd", att, v).transpose(0, 2, 1, 3).reshape(b_s, nq, h * d_v)
    return out @ wo + bo


if __name__ == "__main__":
    def max_rel_err(a, b):
        return float(jnp.max(jnp.abs(a - b)) / (jnp.max(jnp.abs(b)) + 1e-30))

    # Case 1: module-like small shapes (single q/kv tile), f32 and bf16 paths.
    d_model, d_k, d_v, h = 32, 16, 16, 4
    b_s, nq, nk = 2, 8, 8
    key = jax.random.PRNGKey(0)
    kq, kk, kv, kp = jax.random.split(key, 4)
    queries = jax.random.normal(kq, (b_s, nq, d_model), jnp.float32)
    keys = jax.random.normal(kk, (b_s, nk, d_model), jnp.float32)
    values = jax.random.normal(kv, (b_s, nk, d_model), jnp.float32)
    params = init_params(kp, d_model, d_k, d_v, h)
    ref = reference(queries, keys, values, params, h=h, d_k=d_k, d_v=d_v)

    out_f32 = jax.block_until_ready(scaled_dot_product_attention(
        queries, keys, values, params, h=h, d_k=d_k, d_v=d_v,
        compute_dtype=jnp.float32))
    assert out_f32.shape == (b_s, nq, d_model)
    assert max_rel_err(out_f32, ref) < 1e-2, "f32 kernel mismatch vs reference"

    out_bf16 = jax.block_until_ready(scaled_dot_product_attention(
        queries, keys, values, params, h=h, d_k=d_k, d_v=d_v,
        compute_dtype=jnp.bfloat16))
    assert out_bf16.shape == (b_s, nq, d_model)
    assert max_rel_err(out_bf16, ref) < 5e-2, "bf16 kernel mismatch vs reference"

    # Case 2: multiple q/kv tiles to exercise the online-softmax pipeline.
    d_model2, d_k2, d_v2, h2 = 128, 32, 32, 4
    b2, nq2, nk2 = 2, 256, 256
    k2 = jax.random.split(jax.random.PRNGKey(1), 4)
    q2 = jax.random.normal(k2[0], (b2, nq2, d_model2), jnp.float32)
    kk2 = jax.random.normal(k2[1], (b2, nk2, d_model2), jnp.float32)
    vv2 = jax.random.normal(k2[2], (b2, nk2, d_model2), jnp.float32)
    p2 = init_params(k2[3], d_model2, d_k2, d_v2, h2)
    ref2 = reference(q2, kk2, vv2, p2, h=h2, d_k=d_k2, d_v=d_v2)
    out2 = jax.block_until_ready(scaled_dot_product_attention(
        q2, kk2, vv2, p2, h=h2, d_k=d_k2, d_v=d_v2,
        compute_dtype=jnp.float32, q_tile=128, kv_tile=128))
    assert max_rel_err(out2, ref2) < 1e-2, "tiled f32 kernel mismatch vs reference"

    # Case 3: ragged nq/nk (non-divisible) to exercise masked padded tiling,
    # with nonzero biases so unmasked padded keys would be caught.
    d_model3, d_k3, d_v3, h3 = 64, 16, 16, 2
    b3, nq3, nk3 = 2, 40, 72
    k3 = jax.random.split(jax.random.PRNGKey(2), 8)
    q3 = jax.random.normal(k3[0], (b3, nq3, d_model3), jnp.float32)
    kk3 = jax.random.normal(k3[1], (b3, nk3, d_model3), jnp.float32)
    vv3 = jax.random.normal(k3[2], (b3, nk3, d_model3), jnp.float32)
    wq3_, bq3_, wk3_, bk3_, wv3_, bv3_, wo3_, bo3_ = init_params(
        k3[3], d_model3, d_k3, d_v3, h3)
    p3 = (wq3_, 0.01 * jax.random.normal(k3[4], bq3_.shape),
          wk3_, 0.01 * jax.random.normal(k3[5], bk3_.shape),
          wv3_, 0.01 * jax.random.normal(k3[6], bv3_.shape),
          wo3_, 0.01 * jax.random.normal(k3[7], bo3_.shape))
    ref3 = reference(q3, kk3, vv3, p3, h=h3, d_k=d_k3, d_v=d_v3)
    out3 = jax.block_until_ready(scaled_dot_product_attention(
        q3, kk3, vv3, p3, h=h3, d_k=d_k3, d_v=d_v3,
        compute_dtype=jnp.float32, q_tile=32, kv_tile=32))
    assert max_rel_err(out3, ref3) < 1e-2, "ragged/masked kernel mismatch vs reference"

    print("KERNEL_OK")
</pallas_src>

<mosaic_0001>
module attributes {stable_mosaic.version = 11 : i64} {
  func.func @_flash_attn_kernel(%arg0: i32, %arg1: i32, %arg2: i32, %arg3: memref<1x8x16xf32, #tpu.memory_space<vmem>>, %arg4: memref<1x8x16xf32, #tpu.memory_space<vmem>>, %arg5: memref<1x8x16xf32, #tpu.memory_space<vmem>>, %arg6: memref<1x8x16xf32, #tpu.memory_space<vmem>>, %arg7: memref<8x1xf32, #tpu.memory_space<vmem>>, %arg8: memref<8x1xf32, #tpu.memory_space<vmem>>, %arg9: memref<8x16xf32, #tpu.memory_space<vmem>>) attributes {dimension_semantics = [#tpu.dimension_semantics<parallel>, #tpu.dimension_semantics<parallel>, #tpu.dimension_semantics<arbitrary>], iteration_bounds = array<i64: 8, 1, 1>, scalar_prefetch = 0 : i64, scratch_operands = 3 : i64, tpu.core_type = #tpu.core_type<tc>, window_params = [{transform_indices = @transform_0, window_bounds = array<i64: 1, 8, 16>}, {transform_indices = @transform_1, window_bounds = array<i64: 1, 8, 16>}, {transform_indices = @transform_2, window_bounds = array<i64: 1, 8, 16>}, {transform_indices = @transform_3, window_bounds = array<i64: 1, 8, 16>}]} {
    %c0_i32 = arith.constant 0 : i32
    %0 = arith.cmpi eq, %arg2, %c0_i32 : i32
    %1 = arith.extui %0 : i1 to i32
    %c0_i32_0 = arith.constant 0 : i32
    %2 = arith.cmpi ne, %1, %c0_i32_0 : i32
    scf.if %2 {
      %cst_26 = arith.constant 0xFF800000 : f32
      %35 = vector.broadcast %cst_26 : f32 to vector<8x1xf32>
      %c0_27 = arith.constant 0 : index
      %c0_28 = arith.constant 0 : index
      %36 = vector.load %arg7[%c0_27, %c0_28] : memref<8x1xf32, #tpu.memory_space<vmem>>, vector<8x1xf32>
      tpu.vector_store %arg7[%c0_27, %c0_28], %35 {strides = array<i32>} : memref<8x1xf32, #tpu.memory_space<vmem>>, vector<8x1xf32>,
      %cst_29 = arith.constant 0.000000e+00 : f32
      %37 = vector.broadcast %cst_29 : f32 to vector<8x1xf32>
      %c0_30 = arith.constant 0 : index
      %c0_31 = arith.constant 0 : index
      %38 = vector.load %arg8[%c0_30, %c0_31] : memref<8x1xf32, #tpu.memory_space<vmem>>, vector<8x1xf32>
      tpu.vector_store %arg8[%c0_30, %c0_31], %37 {strides = array<i32>} : memref<8x1xf32, #tpu.memory_space<vmem>>, vector<8x1xf32>,
      %cst_32 = arith.constant 0.000000e+00 : f32
      %39 = vector.broadcast %cst_32 : f32 to vector<8x16xf32>
      %c0_33 = arith.constant 0 : index
      %c0_34 = arith.constant 0 : index
      %40 = vector.load %arg9[%c0_33, %c0_34] : memref<8x16xf32, #tpu.memory_space<vmem>>, vector<8x16xf32>
      tpu.vector_store %arg9[%c0_33, %c0_34], %39 {strides = array<i32>} : memref<8x16xf32, #tpu.memory_space<vmem>>, vector<8x16xf32>,
    } else {
    }
    %c0 = arith.constant 0 : index
    %c0_1 = arith.constant 0 : index
    %c0_2 = arith.constant 0 : index
    %3 = vector.load %arg3[%c0, %c0_1, %c0_2] : memref<1x8x16xf32, #tpu.memory_space<vmem>>, vector<1x8x16xf32>
    %4 = vector.shape_cast %3 : vector<1x8x16xf32> to vector<8x16xf32>
    %c0_3 = arith.constant 0 : index
    %c0_4 = arith.constant 0 : index
    %c0_5 = arith.constant 0 : index
    %5 = vector.load %arg4[%c0_3, %c0_4, %c0_5] : memref<1x8x16xf32, #tpu.memory_space<vmem>>, vector<1x8x16xf32>
    %6 = vector.shape_cast %5 : vector<1x8x16xf32> to vector<8x16xf32>
    %c0_6 = arith.constant 0 : index
    %c0_7 = arith.constant 0 : index
    %c0_8 = arith.constant 0 : index
    %7 = vector.load %arg5[%c0_6, %c0_7, %c0_8] : memref<1x8x16xf32, #tpu.memory_space<vmem>>, vector<1x8x16xf32>
    %8 = vector.shape_cast %7 : vector<1x8x16xf32> to vector<8x16xf32>
    %cst = arith.constant dense<0.000000e+00> : vector<8x8xf32>
    %9 = tpu.matmul %4, %6, %cst {dimension_numbers = #tpu.dot_dimension_numbers<[1], [1], [0], [0], [0, 0, 1, 0], [], []>} : vector<8x16xf32>, vector<8x16xf32>, vector<8x8xf32> -> vector<8x8xf32>
    %c0_9 = arith.constant 0 : index
    %c0_10 = arith.constant 0 : index
    %10 = vector.load %arg7[%c0_9, %c0_10] : memref<8x1xf32, #tpu.memory_space<vmem>>, vector<8x1xf32>
    %cst_11 = arith.constant dense<0xFF800000> : vector<8xf32>
    %11 = vector.multi_reduction <maximumf>, %9, %cst_11 [1] : vector<8x8xf32> to vector<8xf32>
    %12 = vector.shape_cast %11 : vector<8xf32> to vector<8x1xf32>
    %13 = arith.maximumf %10, %12 : vector<8x1xf32>
    %14 = arith.subf %10, %13 : vector<8x1xf32>
    %15 = math.exp %14 : vector<8x1xf32>
    %16 = vector.broadcast %13 : vector<8x1xf32> to vector<8x8xf32>
    %17 = arith.subf %9, %16 : vector<8x8xf32>
    %18 = math.exp %17 : vector<8x8xf32>
    %cst_12 = arith.constant dense<0.000000e+00> : vector<8xf32>
    %19 = vector.multi_reduction <add>, %18, %cst_12 [1] : vector<8x8xf32> to vector<8xf32>
    %20 = vector.shape_cast %19 : vector<8xf32> to vector<8x1xf32>
    %cst_13 = arith.constant dense<0.000000e+00> : vector<8x16xf32>
    %21 = tpu.matmul %18, %8, %cst_13 {dimension_numbers = #tpu.dot_dimension_numbers<[1], [0], [0], [1], [0, 0, 1, 1], [], []>} : vector<8x8xf32>, vector<8x16xf32>, vector<8x16xf32> -> vector<8x16xf32>
    %c0_14 = arith.constant 0 : index
    %c0_15 = arith.constant 0 : index
    %22 = vector.load %arg8[%c0_14, %c0_15] : memref<8x1xf32, #tpu.memory_space<vmem>>, vector<8x1xf32>
    %23 = arith.mulf %15, %22 : vector<8x1xf32>
    %24 = arith.addf %23, %20 : vector<8x1xf32>
    %c0_16 = arith.constant 0 : index
    %c0_17 = arith.constant 0 : index
    %25 = vector.load %arg8[%c0_16, %c0_17] : memref<8x1xf32, #tpu.memory_space<vmem>>, vector<8x1xf32>
    tpu.vector_store %arg8[%c0_16, %c0_17], %24 {strides = array<i32>} : memref<8x1xf32, #tpu.memory_space<vmem>>, vector<8x1xf32>,
    %c0_18 = arith.constant 0 : index
    %c0_19 = arith.constant 0 : index
    %26 = vector.load %arg9[%c0_18, %c0_19] : memref<8x16xf32, #tpu.memory_space<vmem>>, vector<8x16xf32>
    %27 = vector.broadcast %15 : vector<8x1xf32> to vector<8x16xf32>
    %28 = arith.mulf %27, %26 : vector<8x16xf32>
    %29 = arith.addf %28, %21 : vector<8x16xf32>
    %c0_20 = arith.constant 0 : index
    %c0_21 = arith.constant 0 : index
    %30 = vector.load %arg9[%c0_20, %c0_21] : memref<8x16xf32, #tpu.memory_space<vmem>>, vector<8x16xf32>
    tpu.vector_store %arg9[%c0_20, %c0_21], %29 {strides = array<i32>} : memref<8x16xf32, #tpu.memory_space<vmem>>, vector<8x16xf32>,
    %c0_22 = arith.constant 0 : index
    %c0_23 = arith.constant 0 : index
    %31 = vector.load %arg7[%c0_22, %c0_23] : memref<8x1xf32, #tpu.memory_space<vmem>>, vector<8x1xf32>
    tpu.vector_store %arg7[%c0_22, %c0_23], %13 {strides = array<i32>} : memref<8x1xf32, #tpu.memory_space<vmem>>, vector<8x1xf32>,
    %c0_i32_24 = arith.constant 0 : i32
    %32 = arith.cmpi eq, %arg2, %c0_i32_24 : i32
    %33 = arith.extui %32 : i1 to i32
    %c0_i32_25 = arith.constant 0 : i32
    %34 = arith.cmpi ne, %33, %c0_i32_25 : i32
    scf.if %34 {
      %c0_26 = arith.constant 0 : index
      %c0_27 = arith.constant 0 : index
      %35 = vector.load %arg9[%c0_26, %c0_27] : memref<8x16xf32, #tpu.memory_space<vmem>>, vector<8x16xf32>
      %c0_28 = arith.constant 0 : index
      %c0_29 = arith.constant 0 : index
      %36 = vector.load %arg8[%c0_28, %c0_29] : memref<8x1xf32, #tpu.memory_space<vmem>>, vector<8x1xf32>
      %37 = vector.broadcast %36 : vector<8x1xf32> to vector<8x16xf32>
      %38 = arith.divf %35, %37 : vector<8x16xf32>
      %c0_30 = arith.constant 0 : index
      %c0_31 = arith.constant 0 : index
      %c0_32 = arith.constant 0 : index
      %39 = vector.load %arg6[%c0_30, %c0_31, %c0_32] : memref<1x8x16xf32, #tpu.memory_space<vmem>>, vector<1x8x16xf32>
      %40 = vector.shape_cast %39 : vector<1x8x16xf32> to vector<8x16xf32>
      %41 = vector.shape_cast %38 : vector<8x16xf32> to vector<1x8x16xf32>
      tpu.vector_store %arg6[%c0_30, %c0_31, %c0_32], %41 {strides = array<i32>} : memref<1x8x16xf32, #tpu.memory_space<vmem>>, vector<1x8x16xf32>,
    } else {
    }
    return
  }
  func.func @transform_0(%arg0: i32, %arg1: i32, %arg2: i32) -> (i32, i32, i32) {
    %c0_i32 = arith.constant 0 : i32
    %c0_i32_0 = arith.constant 0 : i32
    return %arg0, %arg1, %c0_i32 : i32, i32, i32
  }
  func.func @transform_1(%arg0: i32, %arg1: i32, %arg2: i32) -> (i32, i32, i32) {
    %c0_i32 = arith.constant 0 : i32
    %c0_i32_0 = arith.constant 0 : i32
    return %arg0, %arg2, %c0_i32 : i32, i32, i32
  }
  func.func @transform_2(%arg0: i32, %arg1: i32, %arg2: i32) -> (i32, i32, i32) {
    %c0_i32 = arith.constant 0 : i32
    %c0_i32_0 = arith.constant 0 : i32
    return %arg0, %arg2, %c0_i32 : i32, i32, i32
  }
  func.func @transform_3(%arg0: i32, %arg1: i32, %arg2: i32) -> (i32, i32, i32) {
    %c0_i32 = arith.constant 0 : i32
    %c0_i32_0 = arith.constant 0 : i32
    return %arg0, %arg1, %c0_i32 : i32, i32, i32
  }
}

</mosaic_0001>

<bundles_post_ra>
// kernel: scaled_dot_product_attention.1
= control target key start
LH: loop header
LB: loop body
LE: loop exit
PB: predicated region body
PF: predicated region fallthrough
CT: control target
= control target key end

     0   :  { %s689_s12 = smov 0   ;;  %s691_s13 = smov 0   ;;  %s746_s0 = inlined_call_operand.vmem [shape: f32[8,8,16], index: 0, kind: input, shape index: {}]   ;;  %s747_s1 = inlined_call_operand.vmem [shape: f32[8,8,16], index: 1, kind: input, shape index: {}]   ;;  %s748_s2 = inlined_call_operand.vmem [shape: f32[8,8,16], index: 2, kind: input, shape index: {}]   ;;  %s749_s3 = inlined_call_operand.vmem [shape: f32[8,8,16], index: 3, kind: output, shape index: {}]  }
   0x1   :  { %s693_s14 = smov 0  }
   0x2 LB: > { %s32_s15 = sadd.s32 1, %s659_s13  ;;  %p581_p0 = scmp.ge.s32.totalorder %s663_s14, 1  ;;  %s663_s14 = sphi %s693_s14, %s13_s14   ;;  %s659_s13 = sphi %s691_s13, %s751_s13   ;;  %s655_s12 = sphi %s689_s12, %s750_s12  }
   0x3   : > { %p34_p1 = scmp.ge.s32.totalorder %s32_s15, 8  ;;  %p190_p2 = scmp.lt.s32.totalorder %s663_s14, 9 }
   0x5   : > { %s753_s15 = smov (%p34_p1, %s32_s15), 0  ;;  %p191_p3 = pnand %p581_p0, %p190_p2 }
   0x6   : > { %p232_p4 = scmp.lt.s32.totalorder (!%p191_p3), %s655_s12, 7  ;;  %vm267_vm0 = vcmask (!%p191_p3), 130048   ;;  %v665_v0 = vmov (!%p191_p3), 0.0   ;;  %vm666_vm1 = vmmov (!%p191_p3), 0   ;;  %vm264_vm2 = vcmask (!%p191_p3), 7168  }
   0x7   : > { %194 = sbr.rel (%p191_p3) target bundleno = 816 (0x330), region = 32  ;;  %595 = vmatprep.subr.mxu0 (!%p191_p3), %v665_v0  ;;  %268 = vst.msk [vmem:[#allocation4] sm:$0xff] (!%p191_p3), %vm267_vm0, %v665_v0  ;;  %597 = vmatprep.mubr.msk.f32.mxu0 (!%p191_p3), %vm666_vm1, %v665_v0  ;;  %v667_v3 = vmov (!%p191_p3), -inf   ;;  %vm350_vm3 = vcmask (!%p191_p3), 64512   ;;  %v668_v7 = vmov (!%p191_p3), 0  }
   0x8   : > { %600 = vmatprep.subr.mxu1 (!%p191_p3), %v665_v0  ;;  %602 = vmatprep.mubr.msk.f32.mxu1 (!%p191_p3), %vm666_vm1, %v665_v0  ;;  %265 = vst.msk [vmem:[#allocation2] sm:$0xff] (!%p191_p3), %vm264_vm2, %v667_v3  ;;  %266 = vst.msk [vmem:[#allocation3] sm:$0xff] (!%p191_p3), %vm264_vm2, %v665_v0 }
   0x9   : > { %633 = vset.pattern.permute.xlu0 (!%p191_p3), %v668_v7  ;;  %634 = vset.pattern.permute.xlu1 (!%p191_p3), %v668_v7 }
   0xe   : > { %s755_s12 = smov (!%p232_p4, %s655_s12), 7  ;;  %v447_v25 = vld [vmem:[#allocation4] sm:$0xff] }
   0xf   : > { %s708_s16 = sshll.u32 %s755_s12, 3  ;;  %v349_v8 = vld [vmem:[#allocation2] sm:$0xff]  ;;  %v442_v20 = vld [vmem:[#allocation3] sm:$0xff] }
  0x10   : > { %s245_s19 = scalar_lea.vmem %s747_s1, %s708_s16  ;;  %s238_s22 = scalar_lea.vmem %s746_s0, %s708_s16 }
  0x11   : > { %v270_v1 = vld [vmem:[%s245_s19] sm:$0xff]  ;;  %s252_s25 = scalar_lea.vmem %s748_s2, %s708_s16  ;;  %s259_s28 = scalar_lea.vmem %s749_s3, %s708_s16 }
  0x12   : > { %596 = vmatpush3.xpose.msk.msra.mxu0 %vm267_vm0, %v270_v1  ;;  %v269_v2 = vld [vmem:[%s238_s22] sm:$0xff] }
  0x13   : > { %v271_v12 = vld [vmem:[%s252_s25] sm:$0xff] }
  0x14   : > { %601 = vmatpush3.msra.mxu1 %v271_v12 }
  0x15   : > { %598 = vmatmul.mubr.msk.f32.vlgmr.msra.gmra.mrb[0].mxu0 %vm267_vm0, %v269_v2 }
  0xe8   : > { %v345_v4 = vpop.f32.mrb[0].mxu0 }
  0xe9   : > { %v599_v5 = vpop.f32.mrb[1].mxu0  ;;  %v351_v6 = vsel %vm350_vm3, %v345_v4, -inf }
  0xea   : > { %352 = vmax.xlane.f32.xlu0 %v351_v6 }
 0x177   : > { %v353_v9 = vpop.xlane.xlu0 %352 }
 0x178   : > { %v354_v10 = vmax.f32 %v349_v8, %v353_v9 }
 0x17a   : > { %v355_v11 = vsub.f32 %v349_v8, %v354_v10  ;;  %456 = vst.msk [vmem:[#allocation2] sm:$0xff] %vm264_vm2, %v354_v10  ;;  %360 = vperm.xlu0 %633, %v354_v10  }
 0x17c   : > { %v356_v18 = vmul.f32 1.442695, %v355_v11 }
 0x1f9   : > { %v361_v13 = vpop.permute.xlu0 %360 }
 0x1fa   : > { %v363_v14 = vsub.f32 %v345_v4, %v361_v13 }
 0x1fc   : > { %v364_v15 = vmul.f32 1.442695, %v363_v14 }
 0x1fe   : > { %635 = vpow2.f32 %v364_v15 }
 0x1ff   : > { %637 = vpow2.f32 %v356_v18 }
 0x208   : > { %v636_v16 = vpop.eup %635 }
 0x209   : > { %603 = vmatmul.mubr.msk.f32.vlgmr.msra.gmra.mrb[0].mxu1 %vm350_vm3, %v636_v16  ;;  %v366_v17 = vsel %vm350_vm3, %v636_v16, 0.0  ;;  %v638_v19 = vpop.eup %637 }
 0x20a   : > { %367 = vadd.xlane.f32.xlu1 %v366_v17  ;;  %v443_v21 = vmul.f32 %v638_v19, %v442_v20 }
 0x21b   : > { %450 = vperm.xlu1 %634, %v638_v19  }
 0x297   : > { %v368_v22 = vpop.xlane.xlu1 %367 }
 0x298   : > { %v444_v23 = vadd.f32 %v443_v21, %v368_v22 }
 0x29a   : > { %446 = vst.msk [vmem:[#allocation3] sm:$0xff] %vm264_vm2, %v444_v23 }
 0x29b   : > { %v451_v26 = vpop.permute.xlu1 %450 }
 0x29c   : > { %v453_v27 = vmul.f32 %v451_v26, %v447_v25 }
 0x2a1   : > { %v461_v24 = vld [vmem:[#allocation3] sm:$0xff] }
 0x2a2   : > { %464 = vperm.xlu1 %634, %v461_v24  }
 0x2dc   : > { %v438_v28 = vpop.f32.mrb[0].mxu1 }
 0x2dd   : > { %v454_v29 = vadd.f32 %v453_v27, %v438_v28  ;;  %v604_v30 = vpop.f32.mrb[1].mxu1 }
 0x2df   : > { %455 = vst.msk [vmem:[#allocation4] sm:$0xff] %vm267_vm0, %v454_v29 }
 0x2e6   : > { %v460_v33 = vld [vmem:[#allocation4] sm:$0xff] }
 0x321   : > { %v465_v31 = vpop.permute.xlu1 %464 }
 0x322   : > { %639 = vrcp.f32 %v465_v31 }
 0x32c   : > { %v640_v32 = vpop.eup %639 }
 0x32d   : > { %v468_v34 = vmul.f32 %v640_v32, %v460_v33 }
 0x32f   : > { %469 = vst.msk [vmem:[%s259_s28] sm:$0xff] %vm267_vm0, %v468_v34 }
 0x330 PF: > { %s13_s14 = sadd.s32 1, %s663_s14   ;;  %s750_s12 = smov %s659_s13 }
 0x331   : > { %p10_p5 = scmp.ge.s32.totalorder %s13_s14, 10   ;;  %s751_s13 = smov %s753_s15 }
 0x333   :  { %12 = sbr.rel (!%p10_p5) target bundleno = 2 (0x2), region = 76 }

</bundles_post_ra>
